<compile_context>
chip_gen: v7x
topology: tpu7x:2x2x1
jax: 0.10.0
libtpu: 0.0.40
codegen_flags: <defaults>
</compile_context>

<pallas_src>
import functools

import jax
import jax.numpy as jnp
from jax import lax
from jax.experimental import pallas as pl
from jax.experimental.pallas import tpu as pltpu


_TM_MAX = 512  # above this, M is tiled into row blocks (v7x megacore + VMEM cap)


def _round_up(x, m):
    return (x + m - 1) // m * m


@functools.lru_cache(maxsize=None)
def _vmem_limit_bytes():
    """Per-generation scoped-VMEM limit derived from physical capacity."""
    phys = 64 * 1024 * 1024  # conservative default == v7x per-core VMEM
    try:
        cap = getattr(pltpu.get_tpu_info(), "vmem_capacity_bytes", None)
        if cap:
            phys = int(cap)
    except Exception:  # pragma: no cover - CPU tracing / older runtimes
        pass
    # 48 MiB usable on v7x (64 MiB physical), 96 MiB on v5e/v6e (128 MiB).
    return min(phys * 3 // 4, 96 * 1024 * 1024)


def _choose_tiles(m, k, itemsize, tk_cap=None):
    """Pick (m_rows, tm, n_m, tk, n_k) so every VMEM resident fits the budget.

    Residents counted: 2x double-buffered (m_rows, tk) F tiles, plus the f32
    (tm, m_rows) accumulator/output block and the f32 (tm, m_rows) target
    buffer (loss kernel) -- 2 * tm * m_rows * 4 bytes either way.
    """
    if m <= _TM_MAX:
        tm, n_m = m, 1                                   # single row tile
    else:
        m_pad = _round_up(m, 128)
        tm = next(t for t in (512, 256, 128) if m_pad % t == 0)
        n_m = m_pad // tm
    m_rows = n_m * tm

    budget = int(_vmem_limit_bytes() * 0.9)              # slack for Mosaic internals
    fixed = 2 * tm * m_rows * 4
    avail = budget - fixed
    tk_fit = max(128, (avail // (2 * m_rows * itemsize)) // 128 * 128)
    if tk_cap is not None:
        tk_fit = min(tk_fit, max(128, tk_cap // 128 * 128))
    if k <= tk_fit:
        return m_rows, tm, n_m, k, 1                     # single exact K block
    return m_rows, tm, n_m, int(tk_fit), int(pl.cdiv(k, tk_fit))


# ---------------------------------------------------------------------------
# Kernels
# ---------------------------------------------------------------------------

def _load_operands(f_ref, i, *, tm, n_m, tk, k_true):
    """Load the (m_rows, tk) RHS tile and the (tm, tk) LHS row slice.

    The ragged last K block (columns >= K, DMA'd as unspecified padding) is
    masked to zero before the contraction so no wrapper-side K padding pass is
    ever needed.
    """
    ragged_k = (k_true % tk) != 0

    def _mask_cols(v):
        if not ragged_k:
            return v
        col = pl.program_id(1) * tk + lax.broadcasted_iota(jnp.int32, v.shape, 1)
        return jnp.where(col < k_true, v, jnp.zeros_like(v))

    rhs = _mask_cols(f_ref[...])
    if n_m == 1:
        return rhs, rhs
    lhs = _mask_cols(f_ref[pl.ds(pl.multiple_of(i * tm, tm), tm), :])
    return lhs, rhs


def _gram_kernel(f_ref, g_ref, *, inv_denom, k_true, tk, tm, n_m):
    """G[i*tm:(i+1)*tm, :] += F_i_tile @ F.T over the K axis; scale at the end.

    The output block index is constant across the K axis, so g_ref stays
    resident in VMEM and doubles as the f32 accumulator.
    """
    i, k = pl.program_id(0), pl.program_id(1)

    @pl.when(k == 0)
    def _():
        g_ref[...] = jnp.zeros_like(g_ref)

    lhs, rhs = _load_operands(f_ref, i, tm=tm, n_m=n_m, tk=tk, k_true=k_true)
    # F @ F.T expressed as a contraction on axis 1 of both operands (no
    # materialized transpose), f32 accumulation on the MXU.
    g_ref[...] += lax.dot_general(
        lhs, rhs,
        dimension_numbers=(((1,), (1,)), ((), ())),
        preferred_element_type=jnp.float32,
    )

    @pl.when(k == pl.num_programs(1) - 1)
    def _():
        g_ref[...] = g_ref[...] * inv_denom


def _style_loss_kernel(f_ref, t_hbm, part_ref, acc_ref, t_buf, t_sem, *,
                       inv_denom, k_true, tk, tm, n_m, t_start_step):
    """Per row tile: partial = sum((F_i@F.T/denom - T_i)^2); no Gram writeback.

    The target row tile lives in HBM and is DMA'd in one grid step before the
    end (overlapping the final matmuls) instead of being pinned in VMEM for
    the whole K loop.
    """
    i, k = pl.program_id(0), pl.program_id(1)
    n_k = pl.num_programs(1)

    @pl.when(k == 0)
    def _():
        acc_ref[...] = jnp.zeros_like(acc_ref)

    lhs, rhs = _load_operands(f_ref, i, tm=tm, n_m=n_m, tk=tk, k_true=k_true)
    acc_ref[...] += lax.dot_general(
        lhs, rhs,
        dimension_numbers=(((1,), (1,)), ((), ())),
        preferred_element_type=jnp.float32,
    )

    # Late prefetch of this row tile's target block.
    @pl.when(k == t_start_step)
    def _():
        pltpu.make_async_copy(t_hbm.at[i], t_buf, t_sem).start()

    @pl.when(k == n_k - 1)
    def _():
        pltpu.make_async_copy(t_hbm.at[i], t_buf, t_sem).wait()
        diff = acc_ref[...] * inv_denom - t_buf[...]
        # Padded rows/cols (only present when M % 128 != 0 and M > _TM_MAX)
        # are exactly zero in both operands, so the sum over the tile is exact.
        partial = jnp.sum(diff * diff)
        r = lax.broadcasted_iota(jnp.int32, part_ref.shape, 1)
        c = lax.broadcasted_iota(jnp.int32, part_ref.shape, 2)
        part_ref[...] = jnp.where((r == 0) & (c == 0), partial, 0.0)


# ---------------------------------------------------------------------------
# pallas_call wrappers
# ---------------------------------------------------------------------------

def _feature_matrix(x, feature_dtype, m_rows):
    """(B,H,W,C) -> (M, K) feature matrix; rows zero-padded only when needed."""
    b, h, w, c = x.shape
    m, k = b * h, w * c
    feats = x.reshape(m, k)
    if feature_dtype is not None and feats.dtype != jnp.dtype(feature_dtype):
        feats = feats.astype(feature_dtype)
    if m_rows != m:
        # Only hit when M > _TM_MAX and M % 128 != 0; K is never padded.
        feats = jnp.pad(feats, ((0, m_rows - m), (0, 0)))
    return feats, m, k


def _gram_padded(feats, k_true, *, m_rows, tm, n_m, tk, n_k, inv_denom):
    kernel = functools.partial(_gram_kernel, inv_denom=inv_denom,
                               k_true=k_true, tk=tk, tm=tm, n_m=n_m)
    itemsize = feats.dtype.itemsize
    cost = pl.CostEstimate(
        flops=2 * m_rows * m_rows * k_true,
        transcendentals=0,
        bytes_accessed=n_m * m_rows * k_true * itemsize + m_rows * m_rows * 4,
    )
    return pl.pallas_call(
        kernel,
        out_shape=jax.ShapeDtypeStruct((m_rows, m_rows), jnp.float32),
        grid=(n_m, n_k),
        in_specs=[pl.BlockSpec((m_rows, tk), lambda i, kk: (0, kk))],
        out_specs=pl.BlockSpec((tm, m_rows), lambda i, kk: (i, 0)),
        compiler_params=pltpu.CompilerParams(
            dimension_semantics=("parallel", "arbitrary"),
            vmem_limit_bytes=_vmem_limit_bytes(),
        ),
        cost_estimate=cost,
    )(feats)


def _style_loss_padded(feats, target_tiles, k_true, *, m_true, m_rows, tm, n_m,
                       tk, n_k, inv_denom, sl_weight):
    kernel = functools.partial(
        _style_loss_kernel, inv_denom=inv_denom, k_true=k_true, tk=tk, tm=tm,
        n_m=n_m, t_start_step=max(n_k - 2, 0))
    itemsize = feats.dtype.itemsize
    cost = pl.CostEstimate(
        flops=2 * m_rows * m_rows * k_true + 3 * m_rows * m_rows,
        transcendentals=0,
        bytes_accessed=(n_m * m_rows * k_true * itemsize
                        + m_rows * m_rows * 4 + n_m * 8 * 128 * 4),
    )
    partials = pl.pallas_call(
        kernel,
        out_shape=jax.ShapeDtypeStruct((n_m, 8, 128), jnp.float32),
        grid=(n_m, n_k),
        in_specs=[
            pl.BlockSpec((m_rows, tk), lambda i, kk: (0, kk)),
            pl.BlockSpec(memory_space=pl.ANY),   # target Gram stays in HBM
        ],
        out_specs=pl.BlockSpec((1, 8, 128), lambda i, kk: (i, 0, 0)),
        scratch_shapes=[
            pltpu.VMEM((tm, m_rows), jnp.float32),   # f32 Gram accumulator
            pltpu.VMEM((tm, m_rows), jnp.float32),   # late-DMA target buffer
            pltpu.SemaphoreType.DMA,
        ],
        compiler_params=pltpu.CompilerParams(
            dimension_semantics=("parallel", "arbitrary"),
            vmem_limit_bytes=_vmem_limit_bytes(),
        ),
        cost_estimate=cost,
    )(feats, target_tiles)
    # Per-row-tile partial sums -> scalar MSE with the true element count.
    return sl_weight * jnp.sum(partials[:, 0, 0]) * (1.0 / float(m_true * m_true))


# ---------------------------------------------------------------------------
# Public API (mirrors the torch module)
# ---------------------------------------------------------------------------

def gram_matrix(x, *, feature_dtype=None, tk_cap=None):
    """Pallas-backed equivalent of the torch gram_matrix()."""
    b, h, w, c = x.shape
    m, k = b * h, w * c
    dtype = jnp.dtype(feature_dtype) if feature_dtype is not None else x.dtype
    m_rows, tm, n_m, tk, n_k = _choose_tiles(m, k, dtype.itemsize, tk_cap)
    feats, m, k = _feature_matrix(x, feature_dtype, m_rows)
    g = _gram_padded(feats, k, m_rows=m_rows, tm=tm, n_m=n_m, tk=tk, n_k=n_k,
                     inv_denom=1.0 / float(b * h * w * c))
    return g[:m, :m] if m_rows != m else g


class StyleLoss:
    """JAX/Pallas port of the torch StyleLoss module (forward pass).

    feature_dtype=jnp.bfloat16 halves the feature HBM traffic (accumulation
    stays f32); the default (None) keeps full f32 precision.  tk_cap is a
    tuning/testing override for the K tile size.
    """

    def __init__(self, target_feature, sl_weight, *, feature_dtype=None,
                 tk_cap=None):
        self.sl_weight = float(sl_weight)
        self.feature_dtype = feature_dtype
        self._tk_cap = tk_cap

        b, h, w, c = target_feature.shape
        m, k = b * h, w * c
        dtype = (jnp.dtype(feature_dtype) if feature_dtype is not None
                 else target_feature.dtype)
        m_rows, tm, n_m, tk, n_k = _choose_tiles(m, k, dtype.itemsize, tk_cap)
        self._m, self._m_rows, self._tm, self._n_m = m, m_rows, tm, n_m

        feats, _, _ = _feature_matrix(target_feature, feature_dtype, m_rows)
        g = jax.lax.stop_gradient(
            _gram_padded(feats, k, m_rows=m_rows, tm=tm, n_m=n_m, tk=tk,
                         n_k=n_k, inv_denom=1.0 / float(b * h * w * c)))
        self.target = g[:m, :m] if m_rows != m else g

        # Row-tiled, zero-padded copy consumed via late manual DMA by the loss
        # kernel (tiny (M, M) array, cheap to build once).
        t = self.target
        if m_rows != m:
            t = jnp.pad(t, ((0, m_rows - m), (0, m_rows - m)))
        self._target_tiles = t.reshape(n_m, tm, m_rows)

        # torch: self.loss = sl_weight * mse_loss(target, target) == 0 exactly;
        # no kernel launch needed for a known constant.
        self.loss = jnp.zeros((), jnp.float32)

    def __call__(self, x):
        b, h, w, c = x.shape
        m, k = b * h, w * c
        assert m == self._m, "batch_size * h of the input must match the target"
        dtype = (jnp.dtype(self.feature_dtype) if self.feature_dtype is not None
                 else x.dtype)
        m_rows, tm, n_m, tk, n_k = _choose_tiles(m, k, dtype.itemsize, self._tk_cap)
        assert (m_rows, tm, n_m) == (self._m_rows, self._tm, self._n_m)
        feats, _, _ = _feature_matrix(x, self.feature_dtype, m_rows)
        # TODO(synk): mutating self.loss mirrors the torch module but does not
        # compose with jax.jit/grad; return the loss functionally in that case.
        self.loss = _style_loss_padded(
            feats, self._target_tiles, k, m_true=m, m_rows=m_rows, tm=tm,
            n_m=n_m, tk=tk, n_k=n_k, inv_denom=1.0 / float(b * h * w * c),
            sl_weight=self.sl_weight)
        return x  # forward() returns its input unchanged


if __name__ == "__main__":
    root = jax.random.PRNGKey(0)

    def ref_gram(a):
        b, h, w, c = a.shape
        f = a.reshape(b * h, w * c)
        return (f @ f.T) / (b * h * w * c)

    def run_case(idx, shape, sl_weight, tk_cap=None):
        k_t, k_x = jax.random.split(jax.random.fold_in(root, idx))
        target_feature = jax.random.normal(k_t, shape, jnp.float32)
        x = jax.random.normal(k_x, shape, jnp.float32)

        module = StyleLoss(target_feature, sl_weight, tk_cap=tk_cap)
        out = jax.block_until_ready(module(x))
        loss = jax.block_until_ready(module.loss)

        g_ref_t = ref_gram(target_feature)
        g_ref_x = ref_gram(x)
        loss_ref = sl_weight * jnp.mean((g_ref_x - g_ref_t) ** 2)

        assert out.shape == x.shape and bool(jnp.allclose(out, x)), idx
        assert bool(jnp.allclose(module.target, g_ref_t,
                                 atol=1e-5, rtol=1e-3)), idx
        assert bool(jnp.allclose(loss, loss_ref, atol=1e-7, rtol=1e-3)), idx

    # 1) Small single-tile case: single K block, no masking, single row tile.
    run_case(0, (2, 16, 16, 4), 0.5)
    # 2) Multi-step ragged K reduction (K=320 -> 128+128+64): exercises the
    #    in-kernel K mask and the late target DMA (start at k=n_k-2).
    run_case(1, (2, 16, 16, 20), 0.25, tk_cap=128)
    # 3) Row-tiled case (M=600 > 512): parallel row-tile axis, per-tile target
    #    DMA / partial-loss outputs, zero row padding 600 -> 640.
    run_case(2, (2, 300, 4, 8), 1.0)

    # Public gram_matrix helper.
    x0 = jax.random.normal(jax.random.fold_in(root, 7), (2, 16, 16, 4),
                           jnp.float32)
    assert bool(jnp.allclose(gram_matrix(x0), ref_gram(x0),
                             atol=1e-5, rtol=1e-3))

    print("KERNEL_OK")
</pallas_src>

<mosaic_0001>
module attributes {stable_mosaic.version = 11 : i64} {
  func.func @_gram_kernel(%arg0: i32, %arg1: i32, %arg2: memref<32x64xf32, #tpu.memory_space<vmem>>, %arg3: memref<32x32xf32, #tpu.memory_space<vmem>>) attributes {dimension_semantics = [#tpu.dimension_semantics<parallel>, #tpu.dimension_semantics<arbitrary>], iteration_bounds = array<i64: 1, 1>, scalar_prefetch = 0 : i64, scratch_operands = 0 : i64, tpu.core_type = #tpu.core_type<tc>, window_params = [{transform_indices = @transform_0, window_bounds = array<i64: 32, 64>}, {transform_indices = @transform_1, window_bounds = array<i64: 32, 32>}]} {
    %c0_i32 = arith.constant 0 : i32
    %0 = arith.cmpi eq, %arg1, %c0_i32 : i32
    %1 = arith.extui %0 : i1 to i32
    %c0_i32_0 = arith.constant 0 : i32
    %2 = arith.cmpi ne, %1, %c0_i32_0 : i32
    scf.if %2 {
      %cst_8 = arith.constant 0.000000e+00 : f32
      %11 = vector.broadcast %cst_8 : f32 to vector<32x32xf32>
      %c0_9 = arith.constant 0 : index
      %c0_10 = arith.constant 0 : index
      %12 = vector.load %arg3[%c0_9, %c0_10] : memref<32x32xf32, #tpu.memory_space<vmem>>, vector<32x32xf32>
      tpu.vector_store %arg3[%c0_9, %c0_10], %11 {strides = array<i32>} : memref<32x32xf32, #tpu.memory_space<vmem>>, vector<32x32xf32>,
    } else {
    }
    %c0 = arith.constant 0 : index
    %c0_1 = arith.constant 0 : index
    %3 = vector.load %arg2[%c0, %c0_1] : memref<32x64xf32, #tpu.memory_space<vmem>>, vector<32x64xf32>
    %c0_2 = arith.constant 0 : index
    %c0_3 = arith.constant 0 : index
    %4 = vector.load %arg3[%c0_2, %c0_3] : memref<32x32xf32, #tpu.memory_space<vmem>>, vector<32x32xf32>
    %cst = arith.constant dense<0.000000e+00> : vector<32x32xf32>
    %5 = tpu.matmul %3, %3, %cst {dimension_numbers = #tpu.dot_dimension_numbers<[1], [1], [0], [0], [0, 0, 1, 0], [], []>} : vector<32x64xf32>, vector<32x64xf32>, vector<32x32xf32> -> vector<32x32xf32>
    %6 = arith.addf %4, %5 : vector<32x32xf32>
    %c0_4 = arith.constant 0 : index
    %c0_5 = arith.constant 0 : index
    %7 = vector.load %arg3[%c0_4, %c0_5] : memref<32x32xf32, #tpu.memory_space<vmem>>, vector<32x32xf32>
    tpu.vector_store %arg3[%c0_4, %c0_5], %6 {strides = array<i32>} : memref<32x32xf32, #tpu.memory_space<vmem>>, vector<32x32xf32>,
    %c0_i32_6 = arith.constant 0 : i32
    %8 = arith.cmpi eq, %arg1, %c0_i32_6 : i32
    %9 = arith.extui %8 : i1 to i32
    %c0_i32_7 = arith.constant 0 : i32
    %10 = arith.cmpi ne, %9, %c0_i32_7 : i32
    scf.if %10 {
      %c0_8 = arith.constant 0 : index
      %c0_9 = arith.constant 0 : index
      %11 = vector.load %arg3[%c0_8, %c0_9] : memref<32x32xf32, #tpu.memory_space<vmem>>, vector<32x32xf32>
      %cst_10 = arith.constant 4.8828125E-4 : f32
      %12 = vector.broadcast %cst_10 : f32 to vector<32x32xf32>
      %13 = arith.mulf %11, %12 : vector<32x32xf32>
      %c0_11 = arith.constant 0 : index
      %c0_12 = arith.constant 0 : index
      %14 = vector.load %arg3[%c0_11, %c0_12] : memref<32x32xf32, #tpu.memory_space<vmem>>, vector<32x32xf32>
      tpu.vector_store %arg3[%c0_11, %c0_12], %13 {strides = array<i32>} : memref<32x32xf32, #tpu.memory_space<vmem>>, vector<32x32xf32>,
    } else {
    }
    return
  }
  func.func @transform_0(%arg0: i32, %arg1: i32) -> (i32, i32) {
    %c0_i32 = arith.constant 0 : i32
    %c0_i32_0 = arith.constant 0 : i32
    return %c0_i32, %arg1 : i32, i32
  }
  func.func @transform_1(%arg0: i32, %arg1: i32) -> (i32, i32) {
    %c0_i32 = arith.constant 0 : i32
    %c0_i32_0 = arith.constant 0 : i32
    return %arg0, %c0_i32 : i32, i32
  }
}

</mosaic_0001>

<bundles_post_ra>
// kernel: tpu_custom_call.1
= control target key start
LH: loop header
LB: loop body
LE: loop exit
PB: predicated region body
PF: predicated region fallthrough
CT: control target
= control target key end

     0   :  { %6 = vsyncpa [#allocation3], 0  ;;  %s361_s0 = inlined_call_operand.hbm [shape: f32[32,64], index: 0, kind: input, shape index: {}]   ;;  %s362_s1 = inlined_call_operand.hbm [shape: f32[32,32], index: 1, kind: output, shape index: {}]  }
   0x1   :  { %7 = vsyncpa [#allocation4], 0  ;;  %s278_s6 = smov [#allocation2]   ;;  %s230_s10 = scalar_lea.hbm %s361_s0, 512 }
   0x2   :  { %s13_s7 = sshll.u32 %s278_s6, 4  ;;  %p231_p0 = scmp.ne.s32.totalorder %s361_s0, %s230_s10  ;;  %s14_s7 = int_to_ptr.vmem [resolvable:$true] %s13_s7 }
   0x3   :  { %p234_p1 = scmp.lt.u32.totalorder %s230_s10, %s361_s0 }
   0x5   :  { %p236_p2 = pnand %p234_p1, %p231_p0 }
   0x7   :  { %239 = shalt.err (!%p236_p2)
}
   0x8   :  { %s240_s15 = scalar_lea.vmem %s14_s7, 512  ;;  %p245_p4 = scmp.lt.s32.totalorder %s14_s7, %s14_s7 }
   0x9   :  { %p241_p3 = scmp.ne.s32.totalorder %s14_s7, %s240_s15  ;;  %p246_p5 = scmp.lt.s32.totalorder %s240_s15, %s240_s15 }
   0xb   :  { %p247_p6 = por %p246_p5, %p245_p4 }
   0xd   :  { %p248_p7 = pnand %p247_p6, %p241_p3 }
   0xf   :  { %251 = shalt.err (!%p248_p7)
}
  0x10   :  { %s279_s16 = smov 128   ;;  %s280_s17 = smov 8  }
  0x11   :  { %19 = dma.hbm_to_vmem [thread:$0]  %s361_s0, 512, %s14_s7, [#allocation3], %s279_s16, %s279_s16, %s280_s17  }
  0x12   :  { %274 = dma.done.wait [#allocation3], 512  }
  0x13   :  { %275 = vsyncadd [#allocation3], 4294966784  ;;  %vm27_vm0 = vcmask 261120   ;;  %v281_v0 = vmov 0.0   ;;  %vm40_vm1 = vcmask 523264   ;;  %v32_v2 = vld [vmem:[#allocation2] sm:$0xff] }
  0x14   :  { %29 = vst.msk [vmem:[#allocation5 + $0x8] sm:$0xff] %vm27_vm0, %v281_v0  ;;  %28 = vst.msk [vmem:[#allocation5] sm:$0xff] %vm27_vm0, %v281_v0  ;;  %v33_v3 = vld [vmem:[#allocation2 + $0x8] sm:$0xff]  ;;  %v34_v4 = vld [vmem:[#allocation2 + $0x10] sm:$0xff]  ;;  %203 = vmatprep.mubr.msk.f32.mxu0 %vm40_vm1, %v32_v2  ;;  %s282_s0 = smov [#allocation5]  }
  0x15   :  { %30 = vst.msk [vmem:[#allocation5 + $0x10] sm:$0xff] %vm27_vm0, %v281_v0  ;;  %31 = vst.msk [vmem:[#allocation5 + $0x18] sm:$0xff] %vm27_vm0, %v281_v0  ;;  %v209_v5 = vpack.c.bf16 %v33_v3, %v32_v2  ;;  %v35_v6 = vld [vmem:[#allocation2 + $0x18] sm:$0xff]  ;;  %206 = vmatprep.mubr.msk.f32.mxu1 %vm40_vm1, %v34_v4  ;;  %s167_s20 = sshll.u32 %s282_s0, 4  ;;  %s168_s20 = int_to_ptr.vmem [resolvable:$true] %s167_s20 }
  0x16   :  { %vm314_vm2 = vmpackc.low %vm40_vm1, %vm40_vm1  ;;  %v215_v7 = vpack.c.bf16 %v35_v6, %v34_v4  ;;  %s252_s21 = scalar_lea.vmem %s168_s20, 512  ;;  %p257_p9 = scmp.lt.s32.totalorder %s168_s20, %s168_s20 }
  0x17   :  { %211 = vmatprep.subr.msk.bf16.mxu0 %vm314_vm2, %v209_v5  ;;  %221 = vmatprep.subr.msk.bf16.mxu1 %vm314_vm2, %v209_v5  ;;  %p253_p8 = scmp.ne.s32.totalorder %s168_s20, %s252_s21  ;;  %p258_p10 = scmp.lt.s32.totalorder %s252_s21, %s252_s21 }
  0x18   :  { %214 = vmatpush3.bf16.xpose.msk.msra.mxu0 %vm314_vm2, %v209_v5  ;;  %223 = vmatpush3.bf16.xpose.msk.msra.mxu1 %vm314_vm2, %v209_v5 }
  0x19   :  { %217 = vmatprep.subr.msk.bf16.mxu0 %vm314_vm2, %v215_v7  ;;  %222 = vmatprep.subr.msk.bf16.mxu1 %vm314_vm2, %v215_v7  ;;  %p259_p11 = por %p258_p10, %p257_p9 }
  0x1b   :  { %v37_v8 = vld [vmem:[#allocation5 + $0x8] sm:$0xff]  ;;  %v36_v10 = vld [vmem:[#allocation5] sm:$0xff]  ;;  %p260_p12 = pnand %p259_p11, %p253_p8 }
  0x1c   :  { %v39_v9 = vld [vmem:[#allocation5 + $0x18] sm:$0xff]  ;;  %v38_v11 = vld [vmem:[#allocation5 + $0x10] sm:$0xff] }
  0x20   :  { %220 = vmatpush3.bf16.xpose.msk.msra.mxu0 %vm314_vm2, %v215_v7  ;;  %224 = vmatpush3.bf16.xpose.msk.msra.mxu1 %vm314_vm2, %v215_v7 }
  0x27   :  { %204 = vmatmul.mubr.msk.f32.vlgmr.msra.gmra.mrb[0].mxu0 %vm40_vm1, %v33_v3  ;;  %207 = vmatmul.mubr.msk.f32.vlgmr.msra.gmra.mrb[0].mxu1 %vm40_vm1, %v35_v6 }
  0xfa   :  { %v205_v12 = vpop.f32.mrb[0].mxu0  ;;  %v208_v13 = vpop.f32.mrb[0].mxu1 }
  0xfb   :  { %v139_v14 = vadd.f32 %v205_v12, %v37_v8  ;;  %v141_v15 = vadd.f32 %v208_v13, %v39_v9  ;;  %v119_v16 = vpop.f32.mrb[1].mxu0  ;;  %v129_v17 = vpop.f32.mrb[1].mxu1 }
  0xfc   :  { %v138_v18 = vadd.f32 %v119_v16, %v36_v10  ;;  %v140_v19 = vadd.f32 %v129_v17, %v38_v11 }
  0xfd   :  { %144 = vst.msk [vmem:[#allocation5 + $0x8] sm:$0xff] %vm27_vm0, %v139_v14  ;;  %146 = vst.msk [vmem:[#allocation5 + $0x18] sm:$0xff] %vm27_vm0, %v141_v15 }
  0xfe   :  { %143 = vst.msk [vmem:[#allocation5] sm:$0xff] %vm27_vm0, %v138_v18  ;;  %145 = vst.msk [vmem:[#allocation5 + $0x10] sm:$0xff] %vm27_vm0, %v140_v19 }
 0x104   :  { %v151_v20 = vld [vmem:[#allocation5 + $0x8] sm:$0xff]  ;;  %v153_v21 = vld [vmem:[#allocation5 + $0x18] sm:$0xff] }
 0x105   :  { %v150_v22 = vld [vmem:[#allocation5] sm:$0xff]  ;;  %v152_v23 = vld [vmem:[#allocation5 + $0x10] sm:$0xff]  ;;  %v155_v24 = vmul.f32 0.00048828125, %v151_v20  ;;  %v157_v25 = vmul.f32 0.00048828125, %v153_v21 }
 0x106   :  { %v154_v26 = vmul.f32 0.00048828125, %v150_v22  ;;  %v156_v27 = vmul.f32 0.00048828125, %v152_v23 }
 0x107   :  { %159 = vst.msk [vmem:[#allocation5 + $0x8] sm:$0xff] %vm27_vm0, %v155_v24  ;;  %161 = vst.msk [vmem:[#allocation5 + $0x18] sm:$0xff] %vm27_vm0, %v157_v25 }
 0x108   :  { %158 = vst.msk [vmem:[#allocation5] sm:$0xff] %vm27_vm0, %v154_v26  ;;  %160 = vst.msk [vmem:[#allocation5 + $0x10] sm:$0xff] %vm27_vm0, %v156_v27 }
 0x109   :  { %263 = shalt.err (!%p260_p12)
}
 0x10a   :  { %s264_s24 = scalar_lea.hbm %s362_s1, 512 }
 0x10b   :  { %p265_p13 = scmp.ne.s32.totalorder %s362_s1, %s264_s24  ;;  %p268_p0 = scmp.lt.u32.totalorder %s264_s24, %s362_s1 }
 0x10d   :  { %p270_p1 = pnand %p268_p0, %p265_p13 }
 0x10f   :  { %273 = shalt.err (!%p270_p1)
}
 0x110   :  { %173 = dma.vmem_to_hbm [thread:$0]  %s168_s20, 512, %s362_s1, [#allocation4], %s279_s16, %s279_s16, %s280_s17  }
 0x111   :  { %276 = dma.done.wait [#allocation4], 512  }
 0x112   :  { %277 = vsyncadd [#allocation4], 4294966784 }
 0x113   :  { %177 = vsyncpa [#allocation3], 1 }
 0x114   :  { %178 = vsyncpa [#allocation4], 1 }

</bundles_post_ra>
